<compile_context>
chip_gen: v7x
topology: tpu7x:2x2x1
jax: 0.10.0
libtpu: 0.0.40
codegen_flags: <defaults>
</compile_context>

<pallas_src>
import functools

import jax
import jax.numpy as jnp
from jax.experimental import pallas as pl
from jax.experimental.pallas import tpu as pltpu


def _perceptron_kernel(x_ref, w_ref, b_ref, o_ref, *scratch, act):
    # x_ref : (tm, tk)  VMEM   batch-major slice of the input
    # w_ref : (tk, tn)  VMEM   pre-transposed [dim_in, dim_out] slice (NN matmul)
    # b_ref : (1,  tn)  VMEM
    # o_ref : (tm, tn)  VMEM   for f32 outputs it doubles as the accumulator
    # scratch: () or (f32 (tm, tn) accumulator,) for non-f32 outputs
    acc_ref = scratch[0] if scratch else o_ref
    k = pl.program_id(2)

    partial = jnp.dot(x_ref[...], w_ref[...], preferred_element_type=jnp.float32)

    @pl.when(k == 0)
    def _():
        acc_ref[...] = partial            # direct write: no zero-fill + add pass

    @pl.when(k > 0)
    def _():
        acc_ref[...] += partial

    @pl.when(k == pl.num_programs(2) - 1)
    def _():
        y = acc_ref[...] + b_ref[...].astype(jnp.float32)
        if act == "relu":
            y = jnp.maximum(y, 0.0)
        elif act == "log_softmax":
            # The wrapper guarantees the full dim_out lives in this block,
            # so the row-wise LSE is exact (never split across j-tiles).
            m = jnp.max(y, axis=-1, keepdims=True)
            s = y - m
            y = s - jnp.log(jnp.sum(jnp.exp(s), axis=-1, keepdims=True))
        elif act == "sigmoid":
            y = jax.nn.sigmoid(y)
        # act is None -> identity
        o_ref[...] = y.astype(o_ref.dtype)


def _pick_tile(dim, target, align):
    """Largest multiple of `align` <= target that evenly divides `dim`;
    fall back to the full dim (a full-extent block is always legal)."""
    if dim <= target:
        return dim
    t = (target // align) * align
    while t >= align:
        if dim % t == 0:
            return t
        t -= align
    return dim


# Tile working set must also fit v7x (64 MiB physical / 32 MiB scoped default).
_VMEM_TILE_BUDGET = 40 * 1024 * 1024


def _working_set_bytes(tm, tn, tk, in_item, out_item, use_scratch):
    # double-buffered x, w, bias, out tiles + (optional) single f32 accumulator
    dbl = 2 * (tm * tk * in_item + tk * tn * in_item + tn * in_item
               + tm * tn * out_item)
    return dbl + (tm * tn * 4 if use_scratch else 0)


def perceptron_forward(x, weight, bias, act=None, *,
                       tm_target=None, tn_target=512, tk_target=1024,
                       compute_dtype=None, weight_is_transposed=False,
                       split_for_megacore=False):
    """Pallas equivalent of Perceptron.forward.

    x:      [B, dim_in]
    weight: [dim_out, dim_in] (PyTorch nn.Linear convention) unless
            weight_is_transposed=True, in which case [dim_in, dim_out].
    bias:   [dim_out]
    """
    B, dim_in = x.shape
    if weight_is_transposed:
        dim_in_w, dim_out = weight.shape
        w_t = weight
    else:
        dim_out, dim_in_w = weight.shape
        # One-time transpose to [dim_in, dim_out]; amortized for static weights
        # and removes any per-step weight-tile transpose inside the kernel.
        w_t = weight.T
    assert dim_in_w == dim_in

    if compute_dtype is not None:
        x = x.astype(compute_dtype)
        w_t = w_t.astype(compute_dtype)
    elif x.dtype != w_t.dtype:
        w_t = w_t.astype(x.dtype)          # keep MXU operand dtypes consistent

    out_dtype = x.dtype
    in_item = jnp.dtype(x.dtype).itemsize
    out_item = jnp.dtype(out_dtype).itemsize
    use_scratch = out_dtype != jnp.float32  # f32 outputs accumulate in-place

    # Sublane pack of the operand dtype: 8 (f32), 16 (bf16), 32 (i8/fp8).
    tm_align = {4: 8, 2: 16, 1: 32}.get(in_item, 8)
    if tm_target is None:
        tm_target = B                       # weight streams from HBM exactly once

    tm = _pick_tile(B, tm_target, tm_align)
    if act == "log_softmax":
        # Reduction over dim_out: keep the whole feature axis in one block.
        # TODO(synk): for vocab-sized dim_out, switch to an online (flash-style)
        # LSE across j-tiles instead of a full-width block.
        tn = dim_out
    else:
        tn = _pick_tile(dim_out, tn_target, 128)
    tk = _pick_tile(dim_in, tk_target, 128)

    # Shrink (tk, then tn, then tm) until the double-buffered working set fits.
    for _ in range(32):
        if _working_set_bytes(tm, tn, tk, in_item, out_item,
                              use_scratch) <= _VMEM_TILE_BUDGET:
            break
        if tk > 128:
            new_tk = _pick_tile(dim_in, max(128, tk // 2), 128)
            if new_tk < tk:
                tk = new_tk
                continue
        if tn > 128 and act != "log_softmax":
            new_tn = _pick_tile(dim_out, max(128, tn // 2), 128)
            if new_tn < tn:
                tn = new_tn
                continue
        if tm > tm_align:
            new_tm = _pick_tile(B, max(tm_align, tm // 2), tm_align)
            if new_tm < tm:
                tm = new_tm
                continue
        break

    ni, nj, nk = B // tm, dim_out // tn, dim_in // tk
    if split_for_megacore and ni * nj == 1:
        # v7x has 2 TensorCores: give each one a batch tile (costs one extra
        # weight read; only relevant when the whole problem was a single tile).
        new_tm = _pick_tile(B, max(tm_align, tm // 2), tm_align)
        if new_tm < tm:
            tm = new_tm
            ni = B // tm

    grid = (ni, nj, nk)
    b2 = bias.reshape(1, dim_out)

    transcendentals = B * dim_out if act in ("log_softmax", "sigmoid") else 0
    cost = pl.CostEstimate(
        flops=2 * B * dim_in * dim_out,
        transcendentals=int(transcendentals),
        bytes_accessed=int(x.size * in_item * nj           # x re-read per j tile
                           + w_t.size * in_item * ni       # weight re-read per i tile
                           + b2.size * jnp.dtype(b2.dtype).itemsize
                           + B * dim_out * out_item),
    )

    need = _working_set_bytes(tm, tn, tk, in_item, out_item, use_scratch)
    vmem_limit = int(min(48 * 1024 * 1024, max(32 * 1024 * 1024, 2 * need)))

    kernel = functools.partial(_perceptron_kernel, act=act)
    scratch_shapes = [pltpu.VMEM((tm, tn), jnp.float32)] if use_scratch else []

    return pl.pallas_call(
        kernel,
        out_shape=jax.ShapeDtypeStruct((B, dim_out), out_dtype),
        grid_spec=pltpu.PrefetchScalarGridSpec(
            num_scalar_prefetch=0,
            grid=grid,
            in_specs=[
                pl.BlockSpec((tm, tk), lambda i, j, k: (i, k)),   # x
                pl.BlockSpec((tk, tn), lambda i, j, k: (k, j)),   # weight [in,out]
                pl.BlockSpec((1, tn), lambda i, j, k: (0, j)),    # bias
            ],
            out_specs=pl.BlockSpec((tm, tn), lambda i, j, k: (i, j)),
            scratch_shapes=scratch_shapes,
        ),
        compiler_params=pltpu.CompilerParams(
            dimension_semantics=("parallel", "parallel", "arbitrary"),
            vmem_limit_bytes=vmem_limit,
        ),
        cost_estimate=cost,
    )(x, w_t, b2)


def init_perceptron_params(key, dim_in, dim_out):
    """Deterministic init matching Perceptron.__init__ semantics:
    xavier_normal_ weight, PyTorch-default uniform bias."""
    kw, kb = jax.random.split(key)
    std = (2.0 / (dim_in + dim_out)) ** 0.5          # xavier normal, gain=1
    weight = std * jax.random.normal(kw, (dim_out, dim_in), dtype=jnp.float32)
    bound = 1.0 / (dim_in ** 0.5)                    # nn.Linear default bias init
    bias = jax.random.uniform(kb, (dim_out,), dtype=jnp.float32,
                              minval=-bound, maxval=bound)
    return weight, bias


# TODO(synk): the module's `dropout` argument is never used in forward(), so it
# is intentionally not implemented here.

if __name__ == "__main__":
    key = jax.random.PRNGKey(0)
    k_x, k_p, k_x2, k_p2, k_x3, k_p3 = jax.random.split(key, 6)

    # --- small shapes: single-block path, all activations (f32) ---
    B, dim_in, dim_out = 8, 32, 16
    x = jax.random.normal(k_x, (B, dim_in), dtype=jnp.float32)
    weight, bias = init_perceptron_params(k_p, dim_in, dim_out)
    ref_lin = x @ weight.T + bias

    out_none = jax.block_until_ready(perceptron_forward(x, weight, bias, act=None))
    assert jnp.allclose(out_none, ref_lin, atol=1e-5, rtol=1e-5)

    out_relu = jax.block_until_ready(perceptron_forward(x, weight, bias, act="relu"))
    assert jnp.allclose(out_relu, jnp.maximum(ref_lin, 0.0), atol=1e-5, rtol=1e-5)

    out_ls = jax.block_until_ready(
        perceptron_forward(x, weight, bias, act="log_softmax"))
    assert jnp.allclose(out_ls, jax.nn.log_softmax(ref_lin, axis=1),
                        atol=1e-5, rtol=1e-5)

    out_sig = jax.block_until_ready(
        perceptron_forward(x, weight, bias, act="sigmoid"))
    assert jnp.allclose(out_sig, jax.nn.sigmoid(ref_lin), atol=1e-5, rtol=1e-5)

    # --- tiled grid: real (i, j, k) iteration + f32 in-place output accumulator ---
    B2, din2, dout2 = 128, 256, 256
    x2 = jax.random.normal(k_x2, (B2, din2), dtype=jnp.float32)
    w2, b2v = init_perceptron_params(k_p2, din2, dout2)
    ref2 = jnp.maximum(x2 @ w2.T + b2v, 0.0)
    out2 = jax.block_until_ready(
        perceptron_forward(x2, w2, b2v, act="relu",
                           tm_target=64, tn_target=128, tk_target=128))
    assert jnp.allclose(out2, ref2, atol=1e-4, rtol=1e-4)

    # --- bf16 operands: bf16 MXU path + f32 scratch accumulator (nk > 1) ---
    B3, din3, dout3 = 16, 256, 128
    x3 = jax.random.normal(k_x3, (B3, din3), dtype=jnp.float32)
    w3, b3v = init_perceptron_params(k_p3, din3, dout3)
    x3b = x3.astype(jnp.bfloat16)
    w3b = w3.astype(jnp.bfloat16)
    ref3 = jnp.maximum(
        x3b.astype(jnp.float32) @ w3b.astype(jnp.float32).T + b3v, 0.0)
    out3 = jax.block_until_ready(
        perceptron_forward(x3b, w3b, b3v, act="relu", tk_target=128))
    assert jnp.allclose(out3.astype(jnp.float32), ref3, atol=5e-2, rtol=5e-2)

    print("KERNEL_OK")
</pallas_src>

<mosaic_0001>
module attributes {stable_mosaic.version = 11 : i64} {
  func.func @_perceptron_kernel(%arg0: i32, %arg1: i32, %arg2: i32, %arg3: memref<8x32xf32, #tpu.memory_space<vmem>>, %arg4: memref<32x16xf32, #tpu.memory_space<vmem>>, %arg5: memref<1x16xf32, #tpu.memory_space<vmem>>, %arg6: memref<8x16xf32, #tpu.memory_space<vmem>>) attributes {dimension_semantics = [#tpu.dimension_semantics<parallel>, #tpu.dimension_semantics<parallel>, #tpu.dimension_semantics<arbitrary>], iteration_bounds = array<i64: 1, 1, 1>, scalar_prefetch = 0 : i64, scratch_operands = 0 : i64, tpu.core_type = #tpu.core_type<tc>, window_params = [{transform_indices = @transform_0, window_bounds = array<i64: 8, 32>}, {transform_indices = @transform_1, window_bounds = array<i64: 32, 16>}, {transform_indices = @transform_2, window_bounds = array<i64: 1, 16>}, {transform_indices = @transform_3, window_bounds = array<i64: 8, 16>}]} {
    %c0 = arith.constant 0 : index
    %c0_0 = arith.constant 0 : index
    %0 = vector.load %arg3[%c0, %c0_0] : memref<8x32xf32, #tpu.memory_space<vmem>>, vector<8x32xf32>
    %c0_1 = arith.constant 0 : index
    %c0_2 = arith.constant 0 : index
    %1 = vector.load %arg4[%c0_1, %c0_2] : memref<32x16xf32, #tpu.memory_space<vmem>>, vector<32x16xf32>
    %cst = arith.constant dense<0.000000e+00> : vector<8x16xf32>
    %2 = tpu.matmul %0, %1, %cst {dimension_numbers = #tpu.dot_dimension_numbers<[1], [0], [0], [1], [0, 0, 1, 1], [], []>} : vector<8x32xf32>, vector<32x16xf32>, vector<8x16xf32> -> vector<8x16xf32>
    %c0_i32 = arith.constant 0 : i32
    %3 = arith.cmpi eq, %arg2, %c0_i32 : i32
    %4 = arith.extui %3 : i1 to i32
    %c0_i32_3 = arith.constant 0 : i32
    %5 = arith.cmpi ne, %4, %c0_i32_3 : i32
    scf.if %5 {
      %c0_8 = arith.constant 0 : index
      %c0_9 = arith.constant 0 : index
      %12 = vector.load %arg6[%c0_8, %c0_9] : memref<8x16xf32, #tpu.memory_space<vmem>>, vector<8x16xf32>
      tpu.vector_store %arg6[%c0_8, %c0_9], %2 {strides = array<i32>} : memref<8x16xf32, #tpu.memory_space<vmem>>, vector<8x16xf32>,
    } else {
    }
    %c0_i32_4 = arith.constant 0 : i32
    %6 = arith.cmpi sgt, %arg2, %c0_i32_4 : i32
    %7 = arith.extui %6 : i1 to i32
    %c0_i32_5 = arith.constant 0 : i32
    %8 = arith.cmpi ne, %7, %c0_i32_5 : i32
    scf.if %8 {
      %c0_8 = arith.constant 0 : index
      %c0_9 = arith.constant 0 : index
      %12 = vector.load %arg6[%c0_8, %c0_9] : memref<8x16xf32, #tpu.memory_space<vmem>>, vector<8x16xf32>
      %13 = arith.addf %12, %2 : vector<8x16xf32>
      %c0_10 = arith.constant 0 : index
      %c0_11 = arith.constant 0 : index
      %14 = vector.load %arg6[%c0_10, %c0_11] : memref<8x16xf32, #tpu.memory_space<vmem>>, vector<8x16xf32>
      tpu.vector_store %arg6[%c0_10, %c0_11], %13 {strides = array<i32>} : memref<8x16xf32, #tpu.memory_space<vmem>>, vector<8x16xf32>,
    } else {
    }
    %c0_i32_6 = arith.constant 0 : i32
    %9 = arith.cmpi eq, %arg2, %c0_i32_6 : i32
    %10 = arith.extui %9 : i1 to i32
    %c0_i32_7 = arith.constant 0 : i32
    %11 = arith.cmpi ne, %10, %c0_i32_7 : i32
    scf.if %11 {
      %c0_8 = arith.constant 0 : index
      %c0_9 = arith.constant 0 : index
      %12 = vector.load %arg6[%c0_8, %c0_9] : memref<8x16xf32, #tpu.memory_space<vmem>>, vector<8x16xf32>
      %c0_10 = arith.constant 0 : index
      %c0_11 = arith.constant 0 : index
      %13 = vector.load %arg5[%c0_10, %c0_11] : memref<1x16xf32, #tpu.memory_space<vmem>>, vector<1x16xf32>
      %14 = vector.broadcast %13 : vector<1x16xf32> to vector<8x16xf32>
      %15 = arith.addf %12, %14 : vector<8x16xf32>
      %c0_12 = arith.constant 0 : index
      %c0_13 = arith.constant 0 : index
      %16 = vector.load %arg6[%c0_12, %c0_13] : memref<8x16xf32, #tpu.memory_space<vmem>>, vector<8x16xf32>
      tpu.vector_store %arg6[%c0_12, %c0_13], %15 {strides = array<i32>} : memref<8x16xf32, #tpu.memory_space<vmem>>, vector<8x16xf32>,
    } else {
    }
    return
  }
  func.func @transform_0(%arg0: i32, %arg1: i32, %arg2: i32) -> (i32, i32) {
    %c0_i32 = arith.constant 0 : i32
    return %arg0, %arg2 : i32, i32
  }
  func.func @transform_1(%arg0: i32, %arg1: i32, %arg2: i32) -> (i32, i32) {
    %c0_i32 = arith.constant 0 : i32
    return %arg2, %arg1 : i32, i32
  }
  func.func @transform_2(%arg0: i32, %arg1: i32, %arg2: i32) -> (i32, i32) {
    %c0_i32 = arith.constant 0 : i32
    %c0_i32_0 = arith.constant 0 : i32
    return %c0_i32, %arg1 : i32, i32
  }
  func.func @transform_3(%arg0: i32, %arg1: i32, %arg2: i32) -> (i32, i32) {
    %c0_i32 = arith.constant 0 : i32
    return %arg0, %arg1 : i32, i32
  }
}

</mosaic_0001>

<bundles_post_ra>
// kernel: tpu_custom_call.1
= control target key start
LH: loop header
LB: loop body
LE: loop exit
PB: predicated region body
PF: predicated region fallthrough
CT: control target
= control target key end

     0   :  { %v188_v3 = vmov 0.0|0.0   ;;  %vm189_vm0 = vmmov 0   ;;  %v190_v6 = vmov 0.0   ;;  %s242_s0 = inlined_call_operand.vmem [shape: f32[8,32], index: 0, kind: input, shape index: {}]   ;;  %s243_s1 = inlined_call_operand.vmem [shape: f32[32,16], index: 1, kind: input, shape index: {}]   ;;  %s244_s2 = inlined_call_operand.vmem [shape: f32[1,16], index: 2, kind: input, shape index: {}]   ;;  %s245_s3 = inlined_call_operand.hbm [shape: f32[8,16], index: 3, kind: output, shape index: {}]  }
   0x1   :  { %v16_v0 = vld [vmem:[%s243_s1] sm:$0xff]  ;;  %v17_v1 = vld [vmem:[%s243_s1 + $0x8] sm:$0xff]  ;;  %v18_v2 = vld [vmem:[%s243_s1 + $0x10] sm:$0xff]  ;;  %154 = vmatprep.subr.bf16.mxu0 %v188_v3  ;;  %151 = vmatprep.mubr.msk.f32.mxu0 %vm189_vm0, %v190_v6 }
   0x2   :  { %v155_v4 = vpack.c.bf16 %v17_v1, %v16_v0  ;;  %v19_v5 = vld [vmem:[%s243_s1 + $0x18] sm:$0xff] }
   0x3   :  { %8 = vsyncpa [#allocation3], 0  ;;  %v158_v7 = vpack.c.bf16 %v19_v5, %v18_v2  ;;  %v15_v8 = vld [vmem:[%s242_s0] sm:$0xff]  ;;  %vm20_vm1 = vcmask 261120   ;;  %vm98_vm2 = vcmask 130048   ;;  %s191_s23 = smov [#allocation2]  }
   0x4   :  { %156 = vmatpush3.bf16.msra.mxu0 %v155_v4  ;;  %v137_v11 = vld [vmem:[%s244_s2] ss:$0 sm:$0xff]  ;;  %s128_s24 = sshll.u32 %s191_s23, 4  ;;  %s129_s24 = int_to_ptr.vmem [resolvable:$true] %s128_s24 }
   0x5   :  { %157 = vmatprep.subr.bf16.mxu0 %v188_v3  ;;  %s164_s25 = scalar_lea.vmem %s129_s24, 128  ;;  %p169_p1 = scmp.lt.s32.totalorder %s129_s24, %s129_s24 }
   0x6   :  { %p165_p0 = scmp.ne.s32.totalorder %s129_s24, %s164_s25  ;;  %p170_p2 = scmp.lt.s32.totalorder %s164_s25, %s164_s25 }
   0x8   :  { %159 = vmatpush3.bf16.msra.mxu0 %v158_v7  ;;  %p171_p3 = por %p170_p2, %p169_p1 }
   0xa   :  { %p172_p4 = pnand %p171_p3, %p165_p0 }
   0xb   :  { %152 = vmatmul.mubr.msk.f32.vlgmr.msra.gmra.mrb[0].mxu0 %vm20_vm1, %v15_v8 }
  0xde   :  { %v90_v9 = vpop.f32.mrb[0].mxu0 }
  0xdf   :  { %99 = vst.msk [vmem:[#allocation2] sm:$0xff] %vm98_vm2, %v90_v9  ;;  %v153_v10 = vpop.f32.mrb[1].mxu0 }
  0xe6   :  { %v111_v12 = vld [vmem:[#allocation2] sm:$0xff] }
  0xe7   :  { %v119_v13 = vadd.f32 %v137_v11, %v111_v12 }
  0xe9   :  { %121 = vst.msk [vmem:[#allocation2] sm:$0xff] %vm98_vm2, %v119_v13 }
  0xea   :  { %175 = shalt.err (!%p172_p4)
}
  0xeb   :  { %s176_s27 = scalar_lea.hbm %s245_s3, 128 }
  0xec   :  { %p177_p5 = scmp.ne.s32.totalorder %s245_s3, %s176_s27  ;;  %p180_p6 = scmp.lt.u32.totalorder %s176_s27, %s245_s3 }
  0xee   :  { %p182_p7 = pnand %p180_p6, %p177_p5 }
  0xf0   :  { %185 = shalt.err (!%p182_p7)
}
  0xf1   :  { %131 = dma.vmem_to_hbm [thread:$0]  %s129_s24, 128, %s245_s3, [#allocation3]  }
  0xf2   :  { %186 = dma.done.wait [#allocation3], 128  }
  0xf3   :  { %187 = vsyncadd [#allocation3], 4294967168 }
  0xf4   :  { %135 = vsyncpa [#allocation3], 1 }

</bundles_post_ra>
